<compile_context>
chip_gen: v6e
topology: v6e:2x2x1
jax: 0.10.0
libtpu: 0.0.40
codegen_flags: <defaults>
</compile_context>

<pallas_src>
import functools
import math

import jax
import jax.numpy as jnp
from jax import lax
from jax.experimental import pallas as pl
from jax.experimental.pallas import tpu as pltpu


# ----------------------------------------------------------------------------
# Host-side interpolation operators (tiny, built once per call)
# ----------------------------------------------------------------------------
def _bilinear_matrix(out_size, in_size):
    """Row-weight matrix of torch F.interpolate(mode='bilinear', align_corners=False)."""
    dst = jnp.arange(out_size, dtype=jnp.float32)
    src = (dst + 0.5) * (in_size / out_size) - 0.5
    src = jnp.clip(src, 0.0, in_size - 1.0)
    lo = jnp.floor(src).astype(jnp.int32)
    hi = jnp.minimum(lo + 1, in_size - 1)
    w_hi = src - lo.astype(jnp.float32)
    w_lo = 1.0 - w_hi
    rows = jnp.arange(out_size)
    mat = jnp.zeros((out_size, in_size), jnp.float32)
    mat = mat.at[rows, lo].add(w_lo)
    mat = mat.at[rows, hi].add(w_hi)
    return mat


def _nearest_indices(out_size, in_size):
    """torch F.interpolate(mode='nearest'): src = floor(dst * in/out), clamped."""
    idx = (jnp.arange(out_size, dtype=jnp.int32) * in_size) // out_size
    return jnp.minimum(idx, in_size - 1)


def _logit(t):
    if t <= 0.0:
        return -float("inf")
    if t >= 1.0:
        return float("inf")
    return math.log(t / (1.0 - t))


# ----------------------------------------------------------------------------
# Tile selection: VMEM-budgeted, legal for f32/bf16/uint8 tiling on all gens
# ----------------------------------------------------------------------------
_VMEM_BUDGET = 30 * 1024 * 1024      # per-step working-set target (all generations)
_VMEM_LIMIT = 48 * 1024 * 1024       # scoped limit (< v7x 64 MiB physical VMEM)


def _vmem_bytes(tq, th, h, w, out_w, isz):
    blocks = (tq * h * w * isz            # logits block
              + th * h * isz              # Mh block
              + w * out_w * isz           # MwT block
              + tq * th * out_w)          # uint8 output block
    inter = th * (w + out_w) * 4          # fp32 intermediates (one query live at a time)
    return 2 * blocks + 2 * inter         # double-buffered blocks + headroom


def _select_tiles(Q, out_h, h, w, out_w, isz):
    # Row tile: big multiples of 32 (uint8 sublane tiling) / 256 (MXU M-fill), or the
    # full extent for short outputs.  cdiv grids mask the ragged last block.
    th_cands = [out_h] if out_h <= 512 else [512, 256, 128, 64, 32]
    tq_cands = [t for t in (16, 8, 4, 2, 1) if t <= Q] or [Q]
    for tq in tq_cands:
        for th in th_cands:
            if _vmem_bytes(tq, th, h, w, out_w, isz) <= _VMEM_BUDGET:
                return tq, th
    return tq_cands[-1], th_cands[-1]


# ----------------------------------------------------------------------------
# Kernel: per (query-block, row-block)
#   out[q, rows, :] = ((Mh_rows @ logits[q]) @ MwT > logit(thr)).uint8
# ----------------------------------------------------------------------------
def _segm_kernel(tq, logit_thr, m_ref, mh_ref, mwt_ref, out_ref):
    # m_ref:   (tq, h, w)       mask logits block
    # mh_ref:  (th, h)          fused bilinear+crop+nearest row operator
    # mwt_ref: (w,  out_w)      fused column operator (transposed)
    # out_ref: (tq, th, out_w)  uint8 masks
    mh = mh_ref[...]
    mwt = mwt_ref[...]
    thr = jnp.float32(logit_thr)

    def body(q, carry):
        t = jnp.dot(mh, m_ref[q], preferred_element_type=jnp.float32)        # (th, w)
        r = jnp.dot(t.astype(mwt.dtype), mwt,
                    preferred_element_type=jnp.float32)                       # (th, out_w)
        # sigmoid(r) > threshold  <=>  r > logit(threshold)
        out_ref[q] = (r > thr).astype(jnp.uint8)
        return carry

    # fori_loop (not a Python unroll): only one (th, out_w) fp32 live range at a time.
    lax.fori_loop(0, tq, body, 0)


@functools.lru_cache(maxsize=None)
def _build_segm_call(Q, h, w, out_h, out_w, logit_thr, dtype_name):
    isz = jnp.dtype(dtype_name).itemsize
    tq, th = _select_tiles(Q, out_h, h, w, out_w, isz)
    nq, nh = pl.cdiv(Q, tq), pl.cdiv(out_h, th)

    kernel = functools.partial(_segm_kernel, tq, logit_thr)
    flops = 2 * Q * out_h * w * (h + out_w)
    bytes_accessed = (Q * h * w + out_h * h + w * out_w) * isz + Q * out_h * out_w

    call = pl.pallas_call(
        kernel,
        out_shape=jax.ShapeDtypeStruct((Q, out_h, out_w), jnp.uint8),
        grid=(nq, nh),
        in_specs=[
            pl.BlockSpec((tq, h, w), lambda qi, hi: (qi, 0, 0)),
            pl.BlockSpec((th, h), lambda qi, hi: (hi, 0)),
            pl.BlockSpec((w, out_w), lambda qi, hi: (0, 0)),
        ],
        out_specs=pl.BlockSpec((tq, th, out_w), lambda qi, hi: (qi, hi, 0)),
        compiler_params=pltpu.CompilerParams(
            dimension_semantics=("parallel", "parallel"),
            vmem_limit_bytes=_VMEM_LIMIT),
        cost_estimate=pl.CostEstimate(flops=int(flops), transcendentals=0,
                                      bytes_accessed=int(bytes_accessed)),
    )
    return jax.jit(call)


# ----------------------------------------------------------------------------
# Module-like wrapper mirroring PostProcessSegm.forward
# ----------------------------------------------------------------------------
class PostProcessSegmPallas:
    def __init__(self, threshold=0.5, compute_dtype=jnp.bfloat16):
        # compute_dtype=jnp.float32 recovers near-bit-parity with the fp32 torch
        # reference (at higher MXU cost); bf16 may flip pixels whose score sits
        # exactly at the threshold boundary.
        self.threshold = float(threshold)
        self.compute_dtype = jnp.dtype(compute_dtype)

    def __call__(self, results, outputs, orig_target_sizes, max_target_sizes):
        # orig/max_target_sizes: sequences of (h, w) ints — per-image output shapes
        # must be static at trace time on TPU.
        assert len(orig_target_sizes) == len(max_target_sizes)

        masks = jnp.squeeze(outputs["pred_masks"], axis=2)           # (B, Q, h, w)
        B, Q, h, w = masks.shape
        masks_c = masks.astype(self.compute_dtype)                   # single hoisted cast

        max_h = max(int(t[0]) for t in max_target_sizes)
        max_w = max(int(t[1]) for t in max_target_sizes)
        lh = _bilinear_matrix(max_h, h)                               # (max_h, h)
        lw = _bilinear_matrix(max_w, w)                               # (max_w, w)

        logit_thr = _logit(self.threshold)

        for i in range(B):
            img_h, img_w = int(max_target_sizes[i][0]), int(max_target_sizes[i][1])
            out_h, out_w = int(orig_target_sizes[i][0]), int(orig_target_sizes[i][1])

            # Compose crop + nearest resize into the bilinear operators: the final
            # output only ever samples (nearest) rows/cols of the bilinear image that
            # lie inside the crop, so just gather those bilinear weight rows.
            mh = lh[_nearest_indices(out_h, img_h)].astype(self.compute_dtype)      # (out_h, h)
            mwt = lw[_nearest_indices(out_w, img_w)].T.astype(self.compute_dtype)   # (w, out_w)

            fn = _build_segm_call(Q, h, w, out_h, out_w, logit_thr,
                                  self.compute_dtype.name)
            m = fn(masks_c[i], mh, mwt)                               # (Q, out_h, out_w) uint8
            results[i]["masks"] = m[:, None, :, :]                    # (Q, 1, out_h, out_w)
            # TODO(synk): reference returns CPU byte tensors (.cpu()); results here hold
            # device arrays — transfer outside the hot loop if host tensors are needed.
            # TODO(synk): for datasets with many unique image sizes, bucket out_h/out_w
            # (round up + caller-side slice) to bound the number of compiled variants.
        return results


if __name__ == "__main__":
    key = jax.random.PRNGKey(0)
    B, Q, h, w = 2, 8, 16, 16
    pred_masks = jax.random.normal(key, (B, Q, 1, h, w), jnp.float32)

    # per-image (h, w): padded-batch sizes and original image sizes
    max_target_sizes = [(32, 32), (24, 28)]
    orig_target_sizes = [(64, 64), (48, 56)]

    results = [{} for _ in range(B)]
    post = PostProcessSegmPallas(threshold=0.5)
    out = post(results, {"pred_masks": pred_masks}, orig_target_sizes, max_target_sizes)

    for i, r in enumerate(out):
        m = jax.block_until_ready(r["masks"])
        assert m.dtype == jnp.uint8
        assert m.shape == (Q, 1) + tuple(orig_target_sizes[i])
    print("KERNEL_OK")
</pallas_src>

<mosaic_0001>
module attributes {stable_mosaic.version = 11 : i64} {
  func.func @_segm_kernel(%arg0: i32, %arg1: i32, %arg2: memref<8x16x16xbf16, #tpu.memory_space<vmem>>, %arg3: memref<64x16xbf16, #tpu.memory_space<vmem>>, %arg4: memref<16x64xbf16, #tpu.memory_space<vmem>>, %arg5: memref<8x64x64xi8, #tpu.memory_space<vmem>>) attributes {dimension_semantics = [#tpu.dimension_semantics<parallel>, #tpu.dimension_semantics<parallel>], iteration_bounds = array<i64: 1, 1>, scalar_prefetch = 0 : i64, scratch_operands = 0 : i64, tpu.core_type = #tpu.core_type<tc>, window_params = [{transform_indices = @transform_0, window_bounds = array<i64: 8, 16, 16>}, {transform_indices = @transform_1, window_bounds = array<i64: 64, 16>}, {pipeline_mode = #tpu.pipeline_mode<synchronous>, transform_indices = @transform_2, window_bounds = array<i64: 16, 64>}, {transform_indices = @transform_3, window_bounds = array<i64: 8, 64, 64>}]} {
    %c0 = arith.constant 0 : index
    %c0_0 = arith.constant 0 : index
    %0 = vector.load %arg3[%c0, %c0_0] : memref<64x16xbf16, #tpu.memory_space<vmem>>, vector<64x16xbf16>
    %c0_1 = arith.constant 0 : index
    %c0_2 = arith.constant 0 : index
    %1 = vector.load %arg4[%c0_1, %c0_2] : memref<16x64xbf16, #tpu.memory_space<vmem>>, vector<16x64xbf16>
    %cst = arith.constant 0.000000e+00 : f32
    %c0_i32 = arith.constant 0 : i32
    %c8_i32 = arith.constant 8 : i32
    %2 = arith.addi %c0_i32, %c8_i32 : i32
    %c1_i32 = arith.constant 1 : i32
    scf.for %arg6 = %c0_i32 to %2 step %c1_i32  : i32 {
      %3 = arith.index_cast %arg6 : i32 to index
      %c0_4 = arith.constant 0 : index
      %c0_5 = arith.constant 0 : index
      %4 = vector.load %arg2[%3, %c0_4, %c0_5] : memref<8x16x16xbf16, #tpu.memory_space<vmem>>, vector<1x16x16xbf16>
      %5 = vector.shape_cast %4 : vector<1x16x16xbf16> to vector<16x16xbf16>
      %cst_6 = arith.constant dense<0.000000e+00> : vector<64x16xf32>
      %6 = tpu.matmul %0, %5, %cst_6 {dimension_numbers = #tpu.dot_dimension_numbers<[1], [0], [0], [1], [0, 0, 1, 1], [], []>} : vector<64x16xbf16>, vector<16x16xbf16>, vector<64x16xf32> -> vector<64x16xf32>
      %7 = arith.truncf %6 : vector<64x16xf32> to vector<64x16xbf16>
      %cst_7 = arith.constant dense<0.000000e+00> : vector<64x64xf32>
      %8 = tpu.matmul %7, %1, %cst_7 {dimension_numbers = #tpu.dot_dimension_numbers<[1], [0], [0], [1], [0, 0, 1, 1], [], []>} : vector<64x16xbf16>, vector<16x64xbf16>, vector<64x64xf32> -> vector<64x64xf32>
      %9 = vector.broadcast %cst : f32 to vector<64x64xf32>
      %10 = arith.cmpf ogt, %8, %9 : vector<64x64xf32>
      %11 = arith.extui %10 : vector<64x64xi1> to vector<64x64xi8>
      %12 = arith.index_cast %arg6 : i32 to index
      %c0_8 = arith.constant 0 : index
      %c0_9 = arith.constant 0 : index
      %13 = vector.load %arg5[%12, %c0_8, %c0_9] : memref<8x64x64xi8, #tpu.memory_space<vmem>>, vector<1x64x64xi8>
      %14 = vector.shape_cast %13 : vector<1x64x64xi8> to vector<64x64xi8>
      %15 = vector.shape_cast %11 : vector<64x64xi8> to vector<1x64x64xi8>
      tpu.vector_store %arg5[%12, %c0_8, %c0_9], %15 {strides = array<i32>} : memref<8x64x64xi8, #tpu.memory_space<vmem>>, vector<1x64x64xi8>,
    }
    %c8_i32_3 = arith.constant 8 : i32
    return
  }
  func.func @transform_0(%arg0: i32, %arg1: i32) -> (i32, i32, i32) {
    %c0_i32 = arith.constant 0 : i32
    %c0_i32_0 = arith.constant 0 : i32
    %c0_i32_1 = arith.constant 0 : i32
    return %arg0, %c0_i32, %c0_i32_0 : i32, i32, i32
  }
  func.func @transform_1(%arg0: i32, %arg1: i32) -> (i32, i32) {
    %c0_i32 = arith.constant 0 : i32
    %c0_i32_0 = arith.constant 0 : i32
    return %arg1, %c0_i32 : i32, i32
  }
  func.func @transform_2(%arg0: i32, %arg1: i32) -> (i32, i32) {
    %c0_i32 = arith.constant 0 : i32
    %c0_i32_0 = arith.constant 0 : i32
    %c0_i32_1 = arith.constant 0 : i32
    return %c0_i32, %c0_i32_0 : i32, i32
  }
  func.func @transform_3(%arg0: i32, %arg1: i32) -> (i32, i32, i32) {
    %c0_i32 = arith.constant 0 : i32
    %c0_i32_0 = arith.constant 0 : i32
    return %arg0, %arg1, %c0_i32 : i32, i32, i32
  }
}

</mosaic_0001>

<bundles_post_ra>
// kernel: tpu_custom_call.1
= control target key start
LH: loop header
LB: loop body
LE: loop exit
PB: predicated region body
PF: predicated region fallthrough
CT: control target
= control target key end

     0   :  { %8 = vsyncpa [#allocation3], 0  ;;  %s521_s0 = inlined_call_operand.hbm [shape: bf16[8,16,16], index: 0, kind: input, shape index: {}]   ;;  %s522_s1 = inlined_call_operand.vmem [shape: bf16[64,16], index: 1, kind: input, shape index: {}]   ;;  %s523_s2 = inlined_call_operand.vmem [shape: bf16[16,64], index: 2, kind: input, shape index: {}]   ;;  %s524_s3 = inlined_call_operand.hbm [shape: u8[8,64,64], index: 3, kind: output, shape index: {}]  }
   0x1   :  { %9 = vsyncpa [#allocation4], 0  ;;  %s408_s12 = smov [#allocation2]  }
   0x2   :  { %s15_s13 = sshll.u32 %s408_s12, 4  ;;  %s16_s13 = int_to_ptr.vmem [resolvable:$true] %s15_s13 }
   0x3   :  { %s364_s14 = scalar_lea.vmem %s16_s13, 1024  ;;  %p369_p1 = scmp.lt.s32.totalorder %s16_s13, %s16_s13 }
   0x4   :  { %p365_p0 = scmp.ne.s32.totalorder %s16_s13, %s364_s14  ;;  %p370_p2 = scmp.lt.s32.totalorder %s364_s14, %s364_s14 }
   0x6   :  { %p371_p3 = por %p370_p2, %p369_p1 }
   0x8   :  { %p372_p4 = pnand %p371_p3, %p365_p0 }
   0xa   :  { %375 = shalt.err (!%p372_p4)
}
   0xb   :  { %s409_s15 = smov 64   ;;  %s410_s16 = smov 4  }
   0xc   :  { %21 = dma.hbm_to_vmem [thread:$0]  %s521_s0, 1024, %s16_s13, [#allocation3], %s409_s15, %s409_s15, %s410_s16  }
   0xd   :  { %400 = dma.done.wait [#allocation3], 1024  }
   0xe   :  { %401 = vsyncadd [#allocation3], 4294966272  ;;  %v441_v0 = vld [vmem:[%s522_s1] sm:$0xf]  ;;  %v446_v1 = vld [vmem:[%s522_s1 + $0x4] sm:$0xf] }
   0xf   :  { %v451_v2 = vld [vmem:[%s522_s1 + $0x8] sm:$0xf]  ;;  %v456_v3 = vld [vmem:[%s522_s1 + $0xc] sm:$0xf]  ;;  %v461_v4 = vld [vmem:[%s522_s1 + $0x10] sm:$0xf] }
  0x10   :  { %v466_v5 = vld [vmem:[%s522_s1 + $0x14] sm:$0xf]  ;;  %v471_v6 = vld [vmem:[%s522_s1 + $0x18] sm:$0xf]  ;;  %v476_v7 = vld [vmem:[%s522_s1 + $0x1c] sm:$0xf] }
  0x11   :  { %v481_v8 = vld [vmem:[%s523_s2] sm:$0xf]  ;;  %v486_v9 = vld [vmem:[%s523_s2 + $0x4] sm:$0xf]  ;;  %s488_s11 = smov 0  }
  0x12 LB: > { %v293_v10 = vcombine.low %v441_v0, %v446_v1  ;;  %vm79_vm0 = vcmask 130048   ;;  %s308_s1 = sshll.u32 %s406_s11, 3  ;;  %v294_v12 = vcombine.low %v451_v2, %v456_v3  ;;  %v295_v13 = vcombine.low %v461_v4, %v466_v5  ;;  %s309_s2 = sshll.u32 %s406_s11, 4  ;;  %s406_s11 = sphi %s488_s11, %s47_s11  }
  0x13   : > { %s50_s12 = scalar_lea.vmem [#allocation2], %s308_s1  ;;  %v296_v14 = vcombine.low %v471_v6, %v476_v7  ;;  %v302_v15 = vcombine.low %v481_v8, %v486_v9  ;;  %vm262_vm7 = vcmask 523264   ;;  %v411_v33 = vmov 0   ;;  %s261_s13 = scalar_lea.vmem [#allocation5], %s309_s2 }
  0x14   : > { %322 = vmatprep.mubr.msk.bf16.mxu0 %vm79_vm0, %v293_v10  ;;  %v355_v11 = vld [vmem:[%s50_s12] sm:$0xff]   ;;  %s47_s11 = sadd.s32 1, %s406_s11  }
  0x15   : > { %320 = vmatprep.subr.bf16.mxu0 %v355_v11  ;;  %330 = vmatprep.subr.bf16.mxu1 %v302_v15  ;;  %p44_p5 = scmp.ge.s32.totalorder %s47_s11, 8  }
  0x16   : > { %321 = vmatpush3.bf16.msra.mxu0 %v355_v11  ;;  %331 = vmatpush3.bf16.msra.mxu1 %v302_v15  ;;  %s412_s14 = smov (%p44_p5), [#allocation5]  }
  0x17   :  { %s270_s15 = sshll.u32 (%p44_p5), %s412_s14, 4  ;;  %s271_s15 = int_to_ptr.vmem [resolvable:$true] %s270_s15 }
  0x18   :  { %s376_s16 = scalar_lea.vmem (%p44_p5), %s271_s15, 2048  ;;  %p381_p7 = scmp.lt.s32.totalorder (%p44_p5), %s271_s15, %s271_s15 }
  0x19   : > { %323 = vmatmul.mubr.msk.bf16.vlgmr.msra.gmra.mxu0 %vm79_vm0, %v294_v12  ;;  %p377_p6 = scmp.ne.s32.totalorder (%p44_p5), %s271_s15, %s376_s16  ;;  %p382_p8 = scmp.lt.s32.totalorder (%p44_p5), %s376_s16, %s376_s16 }
  0x1a   : > { %326 = vmatprep.mubr.msk.bf16.mxu0 %vm79_vm0, %v295_v13 }
  0x1b   :  { %p383_p9 = por (%p44_p5), %p382_p8, %p381_p7 }
  0x1d   :  { %p384_p10 = pnand (%p44_p5), %p383_p9, %p377_p6 }
  0x21   : > { %327 = vmatmul.mubr.msk.bf16.gmra.mxu0 %vm79_vm0, %v296_v14 }
  0xd9   : > { %v324_v16 = vpop.f32.mrf.mxu0 }
  0xdb   : > { %v126_v17 = vpop.f32.mrf.mxu0 }
  0xdd   : > { %v325_v18 = vpop.f32.mrf.mxu0 }
  0xde   : > { %v158_v21 = vpack.c.bf16 %v325_v18, %v324_v16 }
  0xdf   : > { %v129_v19 = vpop.f32.mrf.mxu0 }
  0xe0   : > { %v157_v20 = vpack.c.bf16 %v129_v19, %v126_v17 }
  0xe1   : > { %v328_v22 = vpop.f32.mrf.mxu0 }
  0xe2   : > { %332 = vmatprep.mubr.msk.bf16.mxu1 %vm79_vm0, %v157_v20 }
  0xe3   : > { %v142_v23 = vpop.f32.mrf.mxu0  ;;  %333 = vmatmul.mubr.msk.bf16.vlgmr.msra.gmra.mxu1 %vm79_vm0, %v158_v21 }
  0xe5   : > { %v329_v24 = vpop.f32.mrf.mxu0 }
  0xe6   : > { %v160_v27 = vpack.c.bf16 %v329_v24, %v328_v22 }
  0xe7   : > { %v145_v25 = vpop.f32.mrf.mxu0 }
  0xe8   : > { %v159_v26 = vpack.c.bf16 %v145_v25, %v142_v23 }
  0xea   : > { %336 = vmatprep.mubr.msk.bf16.mxu1 %vm79_vm0, %v159_v26 }
  0xeb   : > { %337 = vmatmul.mubr.msk.bf16.gmra.mxu1 %vm79_vm0, %v160_v27 }
 0x1a3   : > { %v334_v28 = vpop.f32.mrf.mxu1 }
 0x1a4   : > { %vm246_vm2 = vcmp.gt.f32.partialorder %v334_v28, 0.0 }
 0x1a5   : > { %v213_v29 = vpop.f32.mrf.mxu1 }
 0x1a6   : > { %vm244_vm3 = vcmp.gt.f32.partialorder %v213_v29, 0.0 }
 0x1a7   : > { %v335_v30 = vpop.f32.mrf.mxu1 }
 0x1a8   : > { %vm247_vm1 = vcmp.gt.f32.partialorder %v335_v30, 0.0 }
 0x1a9   : > { %v216_v31 = vpop.f32.mrf.mxu1  ;;  %vm253_vm4 = vmpackc.low %vm247_vm1, %vm246_vm2 }
 0x1aa   : > { %vm245_vm5 = vcmp.gt.f32.partialorder %v216_v31, 0.0 }
 0x1ab   : > { %vm252_vm6 = vmpackc.low %vm245_vm5, %vm244_vm3  ;;  %v338_v32 = vpop.f32.mrf.mxu1 }
 0x1ac   : > { %vm254_vm8 = vmpackc.even %vm253_vm4, %vm252_vm6  ;;  %vm250_vm10 = vcmp.gt.f32.partialorder %v338_v32, 0.0 }
 0x1ad   : > { %v258_v34 = vsel %vm254_vm8, 16843009, %v411_v33  ;;  %v229_v35 = vpop.f32.mrf.mxu1 }
 0x1ae   : > { %263 = vst.msk [vmem:[%s261_s13] sm:$0xff] %vm262_vm7, %v258_v34  ;;  %vm248_vm11 = vcmp.gt.f32.partialorder %v229_v35, 0.0 }
 0x1af   : > { %v339_v36 = vpop.f32.mrf.mxu1 }
 0x1b0   : > { %vm251_vm9 = vcmp.gt.f32.partialorder %v339_v36, 0.0 }
 0x1b1   : > { %v232_v37 = vpop.f32.mrf.mxu1  ;;  %vm256_vm12 = vmpackc.low %vm251_vm9, %vm250_vm10 }
 0x1b2   : > { %vm249_vm13 = vcmp.gt.f32.partialorder %v232_v37, 0.0  ;;  %46 = sbr.rel (!%p44_p5) target bundleno = 18 (0x12), region = 45 }
 0x1b3   : > { %vm255_vm14 = vmpackc.low %vm249_vm13, %vm248_vm11 }
 0x1b4   : > { %vm257_vm15 = vmpackc.even %vm256_vm12, %vm255_vm14 }
 0x1b5   : > { %v259_v38 = vsel %vm257_vm15, 16843009, %v411_v33 }
 0x1b6   : > { %264 = vst.msk [vmem:[%s261_s13 + $0x8] sm:$0xff] %vm262_vm7, %v259_v38 }
 0x1b7   :  { %387 = shalt.err (!%p384_p10)
}
 0x1b8   :  { %s413_s17 = smov 128   ;;  %s414_s18 = smov 8  }
 0x1b9   :  { %276 = dma.vmem_to_hbm [thread:$0]  %s271_s15, 2048, %s524_s3, [#allocation4], %s413_s17, %s413_s17, %s414_s18  }
 0x1ba   :  { %402 = dma.done.wait [#allocation4], 2048  }
 0x1bb   :  { %403 = vsyncadd [#allocation4], 4294965248 }
 0x1bc   :  { %280 = vsyncpa [#allocation3], 1 }
 0x1bd   :  { %281 = vsyncpa [#allocation4], 1 }

</bundles_post_ra>
